<compile_context>
chip_gen: v7x
topology: tpu7x:2x2x1
jax: 0.10.0
libtpu: 0.0.40
codegen_flags: <defaults>
</compile_context>

<pallas_src>
import functools

import jax
import jax.numpy as jnp
from jax.experimental import pallas as pl
from jax.experimental.pallas import tpu as pltpu

_MIB = 1 << 20


def _gce_kernel(logits_ref, targets_ref, out_ref, m_scr, l_scr, ey_scr, *,
                q, batch_size, n_classes, block_b, block_c):
    """Online-softmax GCE over grid = (batch blocks, class blocks)."""
    ci = pl.program_id(1)
    nc = pl.num_programs(1)

    @pl.when(ci == 0)
    def _():
        m_scr[...] = jnp.full_like(m_scr, -jnp.inf)
        l_scr[...] = jnp.zeros_like(l_scr)
        ey_scr[...] = jnp.zeros_like(ey_scr)

    logits = logits_ref[...].astype(jnp.float32)               # (TB, TC) f32
    tb, tc = logits.shape

    # Global class ids of this block's columns (needed for the target gather,
    # and for masking padded tail columns when C % block_c != 0).
    col_ids = ci * block_c + jax.lax.broadcasted_iota(jnp.int32, (tb, tc), 1)
    if n_classes % block_c != 0:
        logits = jnp.where(col_ids < n_classes, logits, -jnp.inf)

    tgt = targets_ref[...]                                      # (TB, 1) int32

    # Online (flash-style) softmax statistics in (TB, 1) scratch.
    m_prev = m_scr[...]
    m_new = jnp.maximum(m_prev, jnp.max(logits, axis=1, keepdims=True))
    alpha = jnp.exp(m_prev - m_new)                             # rescale factor
    e = jnp.exp(logits - m_new)                                 # (TB, TC)  EUP
    l_scr[...] = alpha * l_scr[...] + jnp.sum(e, axis=1, keepdims=True)
    # Gather exp(logit_y - m) from the already-resident `e` tile (the f32
    # logits copy is dead from here on).
    ey_scr[...] = alpha * ey_scr[...] + jnp.sum(
        jnp.where(col_ids == tgt, e, 0.0), axis=1, keepdims=True)
    m_scr[...] = m_new

    @pl.when(ci == nc - 1)
    def _():
        # log p_y = log(e_y) - log(sum e);  loss = (1 - exp(q*log p_y)) / q.
        log_p_y = jnp.log(ey_scr[...]) - jnp.log(l_scr[...])    # (TB, 1), <= 0
        per_sample = (1.0 - jnp.exp(q * log_p_y)) * (1.0 / q)
        if batch_size % block_b != 0:
            # Runs only in this finalize step (once per output block), and the
            # predicate is trivially true for every non-tail batch block.
            row_ids = (pl.program_id(0) * block_b
                       + jax.lax.broadcasted_iota(jnp.int32, (tb, 1), 0))
            per_sample = jnp.where(row_ids < batch_size, per_sample, 0.0)
        out_ref[...] = per_sample


def _round_up(x, m):
    return ((x + m - 1) // m) * m


def _choose_tiles(batch, n_classes, in_itemsize):
    """Pick (block_b, block_c, vmem_limit_bytes) with honest VMEM accounting."""
    try:
        vmem_phys = int(pltpu.get_tpu_info().vmem_capacity_bytes)
    except Exception:
        vmem_phys = 64 * _MIB  # conservative default (v7x per-TC VMEM)

    # Cap each single logits input buffer at a few MiB: a streaming kernel is
    # already at ~85% of HBM roofline with ~512-row tiles, and small tiles keep
    # many grid steps alive for pipelining / megacore sharding.
    per_buf_cap = 4 * _MIB if vmem_phys <= 64 * _MIB else 8 * _MIB
    vmem_budget = max(16 * _MIB, vmem_phys - 8 * _MIB)  # compiler headroom

    c_pad = _round_up(n_classes, 128)

    def total_need(tb, tc):
        tc_eff = _round_up(tc, 128)
        in_bytes = 2 * tb * tc_eff * in_itemsize          # double-buffered input
        f32_ws = 3 * tb * tc_eff * 4                      # exp tile + iota + select
        small = 2 * 2 * tb * 4 + (256 << 10)              # targets/out bufs + slack
        return in_bytes + f32_ws + small

    # First try: full class axis in a single block; largest TB (mult of 8)
    # satisfying both the per-buffer cap and the total-VMEM budget.
    tb_buf = per_buf_cap // max(c_pad * in_itemsize, 1)
    tb_tot = vmem_budget // max(c_pad * (2 * in_itemsize + 12), 1)
    tb = (min(tb_buf, tb_tot) // 8) * 8

    if tb >= 8:
        block_b = tb
        block_c = n_classes
    else:
        # Class axis too large even for 8 rows: split C (online softmax path).
        block_b = 8
        tc_buf = per_buf_cap // (8 * in_itemsize)
        tc_tot = vmem_budget // (8 * (2 * in_itemsize + 12))
        block_c = (min(tc_buf, tc_tot) // 128) * 128
        block_c = int(max(128, min(block_c, c_pad)))

    # Keep >= ~8 batch grid steps whenever B allows (2 TCs x >=2 steps on v7x,
    # plus proper prologue/epilogue DMA overlap on all generations).
    min_steps_tb = max(8, _round_up(-(-batch // 8), 8))
    block_b = min(block_b, min_steps_tb)
    block_b = min(block_b, _round_up(batch, 8))
    block_b = max(8, block_b)

    need = total_need(block_b, block_c)
    vmem_limit = int(min(max(need + 2 * _MIB, 16 * _MIB), vmem_phys - 2 * _MIB))
    return block_b, int(block_c), vmem_limit


def generalized_cross_entropy_loss(logits, targets, q=0.7, reduction="mean",
                                   downcast_inputs=True,
                                   block_b=None, block_c=None):
    """Pallas TPU implementation of GeneralizedCrossEntropyLoss.forward.

    Args:
      logits:  (B, C) float array. If f32 and `downcast_inputs`, it is fed to
               the kernel as bf16 (halves HBM read traffic); in-kernel math is
               always f32.
      targets: (B,) int array of class indices.
      q:       robustness hyperparameter in (0, 1].
      reduction: 'mean' | 'sum' | 'none'.
      block_b / block_c: optional tile-size overrides (testing / tuning).
    Returns:
      scalar for 'mean'/'sum', (B,) array for 'none' (matching PyTorch).
    """
    assert 0 < q <= 1, "q must be in (0, 1]"
    assert reduction in ("mean", "sum", "none")
    batch, n_classes = logits.shape

    if downcast_inputs and logits.dtype == jnp.float32:
        # Halve the dominant HBM read stream; kernel math stays f32.
        logits = logits.astype(jnp.bfloat16)

    targets_2d = targets.astype(jnp.int32).reshape(batch, 1)

    auto_bb, auto_bc, vmem_limit = _choose_tiles(
        batch, n_classes, jnp.dtype(logits.dtype).itemsize)
    block_b = auto_bb if block_b is None else int(block_b)
    block_c = auto_bc if block_c is None else int(block_c)

    grid = (pl.cdiv(batch, block_b), pl.cdiv(n_classes, block_c))

    kernel = functools.partial(
        _gce_kernel, q=float(q), batch_size=batch, n_classes=n_classes,
        block_b=block_b, block_c=block_c)

    per_sample = pl.pallas_call(
        kernel,
        out_shape=jax.ShapeDtypeStruct((batch, 1), jnp.float32),
        grid_spec=pltpu.PrefetchScalarGridSpec(
            num_scalar_prefetch=0,
            grid=grid,
            in_specs=[
                pl.BlockSpec((block_b, block_c), lambda i, j: (i, j)),
                pl.BlockSpec((block_b, 1), lambda i, j: (i, 0)),
            ],
            out_specs=pl.BlockSpec((block_b, 1), lambda i, j: (i, 0)),
            scratch_shapes=[pltpu.VMEM((block_b, 1), jnp.float32)] * 3,
        ),
        compiler_params=pltpu.CompilerParams(
            dimension_semantics=("parallel", "arbitrary"),
            vmem_limit_bytes=vmem_limit,
        ),
    )(logits, targets_2d)

    per_sample = per_sample.reshape(batch)
    if reduction == "mean":
        return jnp.mean(per_sample)
    if reduction == "sum":
        return jnp.sum(per_sample)
    return per_sample


if __name__ == "__main__":
    key = jax.random.PRNGKey(0)
    k1, k2, k3, k4 = jax.random.split(key, 4)
    q = 0.7

    def ref_loss(lg, tg, qq):
        probs = jax.nn.softmax(lg.astype(jnp.float32), axis=1)
        py = probs[jnp.arange(lg.shape[0]), tg]
        return (1.0 - py ** qq) / qq

    # Case 1: small shapes, single class block, default bf16 input downcast.
    B, C = 16, 128
    logits = jax.random.normal(k1, (B, C), dtype=jnp.float32)
    targets = jax.random.randint(k2, (B,), 0, C, dtype=jnp.int32)

    out_none = jax.block_until_ready(
        generalized_cross_entropy_loss(logits, targets, q=q, reduction="none"))
    ref_none_bf16 = ref_loss(logits.astype(jnp.bfloat16), targets, q)
    assert jnp.allclose(out_none, ref_none_bf16, atol=2e-5, rtol=2e-5), (
        out_none, ref_none_bf16)

    out_mean = jax.block_until_ready(
        generalized_cross_entropy_loss(logits, targets, q=q, reduction="mean"))
    assert jnp.allclose(out_mean, jnp.mean(ref_none_bf16), atol=2e-5, rtol=2e-5)

    # Case 2: f32 inputs end-to-end (no downcast), exact f32 reference.
    out_f32 = jax.block_until_ready(
        generalized_cross_entropy_loss(logits, targets, q=q, reduction="none",
                                       downcast_inputs=False))
    assert jnp.allclose(out_f32, ref_loss(logits, targets, q),
                        atol=1e-5, rtol=1e-5)

    # Case 3: force a class-axis split (exercises the online-softmax path and
    # the padded-tail-column masking: C=200 with 128-wide class blocks).
    B2, C2 = 16, 200
    logits2 = jax.random.normal(k3, (B2, C2), dtype=jnp.float32)
    targets2 = jax.random.randint(k4, (B2,), 0, C2, dtype=jnp.int32)
    out_split = jax.block_until_ready(
        generalized_cross_entropy_loss(logits2, targets2, q=q, reduction="none",
                                       downcast_inputs=False, block_c=128))
    assert jnp.allclose(out_split, ref_loss(logits2, targets2, q),
                        atol=1e-5, rtol=1e-5)

    print("KERNEL_OK")
</pallas_src>

<mosaic_0001>
module attributes {stable_mosaic.version = 11 : i64} {
  func.func @_gce_kernel(%arg0: i32, %arg1: i32, %arg2: memref<8x128xbf16, #tpu.memory_space<vmem>>, %arg3: memref<8x1xi32, #tpu.memory_space<vmem>>, %arg4: memref<8x1xf32, #tpu.memory_space<vmem>>, %arg5: memref<8x1xf32, #tpu.memory_space<vmem>>, %arg6: memref<8x1xf32, #tpu.memory_space<vmem>>, %arg7: memref<8x1xf32, #tpu.memory_space<vmem>>) attributes {dimension_semantics = [#tpu.dimension_semantics<parallel>, #tpu.dimension_semantics<arbitrary>], iteration_bounds = array<i64: 2, 1>, scalar_prefetch = 0 : i64, scratch_operands = 3 : i64, tpu.core_type = #tpu.core_type<tc>, window_params = [{transform_indices = @transform_0, window_bounds = array<i64: 8, 128>}, {transform_indices = @transform_1, window_bounds = array<i64: 8, 1>}, {transform_indices = @transform_2, window_bounds = array<i64: 8, 1>}]} {
    %c0_i32 = arith.constant 0 : i32
    %0 = arith.cmpi eq, %arg1, %c0_i32 : i32
    %1 = arith.extui %0 : i1 to i32
    %c0_i32_0 = arith.constant 0 : i32
    %2 = arith.cmpi ne, %1, %c0_i32_0 : i32
    scf.if %2 {
      %cst_21 = arith.constant 0xFF800000 : f32
      %39 = vector.broadcast %cst_21 : f32 to vector<8x1xf32>
      %c0_22 = arith.constant 0 : index
      %c0_23 = arith.constant 0 : index
      %40 = vector.load %arg5[%c0_22, %c0_23] : memref<8x1xf32, #tpu.memory_space<vmem>>, vector<8x1xf32>
      tpu.vector_store %arg5[%c0_22, %c0_23], %39 {strides = array<i32>} : memref<8x1xf32, #tpu.memory_space<vmem>>, vector<8x1xf32>,
      %cst_24 = arith.constant 0.000000e+00 : f32
      %41 = vector.broadcast %cst_24 : f32 to vector<8x1xf32>
      %c0_25 = arith.constant 0 : index
      %c0_26 = arith.constant 0 : index
      %42 = vector.load %arg6[%c0_25, %c0_26] : memref<8x1xf32, #tpu.memory_space<vmem>>, vector<8x1xf32>
      tpu.vector_store %arg6[%c0_25, %c0_26], %41 {strides = array<i32>} : memref<8x1xf32, #tpu.memory_space<vmem>>, vector<8x1xf32>,
      %cst_27 = arith.constant 0.000000e+00 : f32
      %43 = vector.broadcast %cst_27 : f32 to vector<8x1xf32>
      %c0_28 = arith.constant 0 : index
      %c0_29 = arith.constant 0 : index
      %44 = vector.load %arg7[%c0_28, %c0_29] : memref<8x1xf32, #tpu.memory_space<vmem>>, vector<8x1xf32>
      tpu.vector_store %arg7[%c0_28, %c0_29], %43 {strides = array<i32>} : memref<8x1xf32, #tpu.memory_space<vmem>>, vector<8x1xf32>,
    } else {
    }
    %c0 = arith.constant 0 : index
    %c0_1 = arith.constant 0 : index
    %3 = vector.load %arg2[%c0, %c0_1] : memref<8x128xbf16, #tpu.memory_space<vmem>>, vector<8x128xbf16>
    %4 = arith.extf %3 : vector<8x128xbf16> to vector<8x128xf32>
    %c128_i32 = arith.constant 128 : i32
    %5 = arith.muli %arg1, %c128_i32 : i32
    %6 = tpu.iota {dimensions = array<i32: 1>} : vector<8x128xi32>
    %7 = vector.broadcast %5 : i32 to vector<8x128xi32>
    %8 = arith.addi %7, %6 : vector<8x128xi32>
    %c0_2 = arith.constant 0 : index
    %c0_3 = arith.constant 0 : index
    %9 = vector.load %arg3[%c0_2, %c0_3] : memref<8x1xi32, #tpu.memory_space<vmem>>, vector<8x1xi32>
    %c0_4 = arith.constant 0 : index
    %c0_5 = arith.constant 0 : index
    %10 = vector.load %arg5[%c0_4, %c0_5] : memref<8x1xf32, #tpu.memory_space<vmem>>, vector<8x1xf32>
    %cst = arith.constant dense<0xFF800000> : vector<8xf32>
    %11 = vector.multi_reduction <maximumf>, %4, %cst [1] : vector<8x128xf32> to vector<8xf32>
    %12 = vector.shape_cast %11 : vector<8xf32> to vector<8x1xf32>
    %13 = arith.maximumf %10, %12 : vector<8x1xf32>
    %14 = arith.subf %10, %13 : vector<8x1xf32>
    %15 = math.exp %14 : vector<8x1xf32>
    %16 = vector.broadcast %13 : vector<8x1xf32> to vector<8x128xf32>
    %17 = arith.subf %4, %16 : vector<8x128xf32>
    %18 = math.exp %17 : vector<8x128xf32>
    %c0_6 = arith.constant 0 : index
    %c0_7 = arith.constant 0 : index
    %19 = vector.load %arg6[%c0_6, %c0_7] : memref<8x1xf32, #tpu.memory_space<vmem>>, vector<8x1xf32>
    %20 = arith.mulf %15, %19 : vector<8x1xf32>
    %cst_8 = arith.constant dense<0.000000e+00> : vector<8xf32>
    %21 = vector.multi_reduction <add>, %18, %cst_8 [1] : vector<8x128xf32> to vector<8xf32>
    %22 = vector.shape_cast %21 : vector<8xf32> to vector<8x1xf32>
    %23 = arith.addf %20, %22 : vector<8x1xf32>
    %c0_9 = arith.constant 0 : index
    %c0_10 = arith.constant 0 : index
    %24 = vector.load %arg6[%c0_9, %c0_10] : memref<8x1xf32, #tpu.memory_space<vmem>>, vector<8x1xf32>
    tpu.vector_store %arg6[%c0_9, %c0_10], %23 {strides = array<i32>} : memref<8x1xf32, #tpu.memory_space<vmem>>, vector<8x1xf32>,
    %c0_11 = arith.constant 0 : index
    %c0_12 = arith.constant 0 : index
    %25 = vector.load %arg7[%c0_11, %c0_12] : memref<8x1xf32, #tpu.memory_space<vmem>>, vector<8x1xf32>
    %26 = arith.mulf %15, %25 : vector<8x1xf32>
    %27 = vector.broadcast %9 : vector<8x1xi32> to vector<8x128xi32>
    %28 = arith.cmpi eq, %8, %27 : vector<8x128xi32>
    %cst_13 = arith.constant 0.000000e+00 : f32
    %29 = vector.broadcast %cst_13 : f32 to vector<8x128xf32>
    %30 = arith.select %28, %18, %29 : vector<8x128xi1>, vector<8x128xf32>
    %cst_14 = arith.constant dense<0.000000e+00> : vector<8xf32>
    %31 = vector.multi_reduction <add>, %30, %cst_14 [1] : vector<8x128xf32> to vector<8xf32>
    %32 = vector.shape_cast %31 : vector<8xf32> to vector<8x1xf32>
    %33 = arith.addf %26, %32 : vector<8x1xf32>
    %c0_15 = arith.constant 0 : index
    %c0_16 = arith.constant 0 : index
    %34 = vector.load %arg7[%c0_15, %c0_16] : memref<8x1xf32, #tpu.memory_space<vmem>>, vector<8x1xf32>
    tpu.vector_store %arg7[%c0_15, %c0_16], %33 {strides = array<i32>} : memref<8x1xf32, #tpu.memory_space<vmem>>, vector<8x1xf32>,
    %c0_17 = arith.constant 0 : index
    %c0_18 = arith.constant 0 : index
    %35 = vector.load %arg5[%c0_17, %c0_18] : memref<8x1xf32, #tpu.memory_space<vmem>>, vector<8x1xf32>
    tpu.vector_store %arg5[%c0_17, %c0_18], %13 {strides = array<i32>} : memref<8x1xf32, #tpu.memory_space<vmem>>, vector<8x1xf32>,
    %c0_i32_19 = arith.constant 0 : i32
    %36 = arith.cmpi eq, %arg1, %c0_i32_19 : i32
    %37 = arith.extui %36 : i1 to i32
    %c0_i32_20 = arith.constant 0 : i32
    %38 = arith.cmpi ne, %37, %c0_i32_20 : i32
    scf.if %38 {
      %c0_21 = arith.constant 0 : index
      %c0_22 = arith.constant 0 : index
      %39 = vector.load %arg7[%c0_21, %c0_22] : memref<8x1xf32, #tpu.memory_space<vmem>>, vector<8x1xf32>
      %40 = math.log %39 : vector<8x1xf32>
      %c0_23 = arith.constant 0 : index
      %c0_24 = arith.constant 0 : index
      %41 = vector.load %arg6[%c0_23, %c0_24] : memref<8x1xf32, #tpu.memory_space<vmem>>, vector<8x1xf32>
      %42 = math.log %41 : vector<8x1xf32>
      %43 = arith.subf %40, %42 : vector<8x1xf32>
      %cst_25 = arith.constant 0.699999988 : f32
      %44 = vector.broadcast %cst_25 : f32 to vector<8x1xf32>
      %45 = arith.mulf %44, %43 : vector<8x1xf32>
      %46 = math.exp %45 : vector<8x1xf32>
      %cst_26 = arith.constant 1.000000e+00 : f32
      %47 = vector.broadcast %cst_26 : f32 to vector<8x1xf32>
      %48 = arith.subf %47, %46 : vector<8x1xf32>
      %cst_27 = arith.constant 1.42857146 : f32
      %49 = vector.broadcast %cst_27 : f32 to vector<8x1xf32>
      %50 = arith.mulf %48, %49 : vector<8x1xf32>
      %c0_28 = arith.constant 0 : index
      %c0_29 = arith.constant 0 : index
      %51 = vector.load %arg4[%c0_28, %c0_29] : memref<8x1xf32, #tpu.memory_space<vmem>>, vector<8x1xf32>
      tpu.vector_store %arg4[%c0_28, %c0_29], %50 {strides = array<i32>} : memref<8x1xf32, #tpu.memory_space<vmem>>, vector<8x1xf32>,
    } else {
    }
    return
  }
  func.func @transform_0(%arg0: i32, %arg1: i32) -> (i32, i32) {
    %c0_i32 = arith.constant 0 : i32
    return %arg0, %arg1 : i32, i32
  }
  func.func @transform_1(%arg0: i32, %arg1: i32) -> (i32, i32) {
    %c0_i32 = arith.constant 0 : i32
    %c0_i32_0 = arith.constant 0 : i32
    return %arg0, %c0_i32 : i32, i32
  }
  func.func @transform_2(%arg0: i32, %arg1: i32) -> (i32, i32) {
    %c0_i32 = arith.constant 0 : i32
    %c0_i32_0 = arith.constant 0 : i32
    return %arg0, %c0_i32 : i32, i32
  }
}

</mosaic_0001>

<bundles_post_ra>
// kernel: tpu_custom_call.1
= control target key start
LH: loop header
LB: loop body
LE: loop exit
PB: predicated region body
PF: predicated region fallthrough
CT: control target
= control target key end

     0   :  { %s412_s9 = smov 0   ;;  %s414_s10 = smov 0   ;;  %s463_s0 = inlined_call_operand.vmem [shape: bf16[16,128], index: 0, kind: input, shape index: {}]   ;;  %s464_s1 = inlined_call_operand.vmem [shape: s32[16,1], index: 1, kind: input, shape index: {}]   ;;  %s465_s2 = inlined_call_operand.vmem [shape: f32[16,1], index: 2, kind: output, shape index: {}]  }
   0x1   :  { %s416_s11 = smov 0  }
   0x2 LB: > { %s24_s12 = sadd.s32 1, %s388_s10  ;;  %p325_p0 = scmp.ge.s32.totalorder %s392_s11, 1  ;;  %s392_s11 = sphi %s416_s11, %s12_s11   ;;  %s388_s10 = sphi %s414_s10, %s467_s10   ;;  %s384_s9 = sphi %s412_s9, %s466_s9  }
   0x3   : > { %p26_p1 = scmp.ge.s32.totalorder %s24_s12, 2  ;;  %p137_p2 = scmp.lt.s32.totalorder %s392_s11, 3 }
   0x5   : > { %s469_s12 = smov (%p26_p1, %s24_s12), 0  ;;  %p138_p3 = pnand %p325_p0, %p137_p2 }
   0x6   : > { %p164_p4 = scmp.lt.s32.totalorder (!%p138_p3), %s384_s9, 1  ;;  %vm183_vm0 = vcmask (!%p138_p3), 7168   ;;  %v394_v0 = vmov (!%p138_p3), -inf   ;;  %v395_v3 = vmov (!%p138_p3), 0   ;;  %v396_v5 = vmov (!%p138_p3), 0.0  }
   0x7   : > { %141 = sbr.rel (%p138_p3) target bundleno = 498 (0x1f2), region = 28  ;;  %184 = vst.msk [vmem:[#allocation2] sm:$0xff] (!%p138_p3), %vm183_vm0, %v394_v0  ;;  %358 = vset.pattern.permute.xlu0 (!%p138_p3), %v395_v3  ;;  %359 = vset.pattern.permute.xlu1 (!%p138_p3), %v395_v3  ;;  %185 = vst.msk [vmem:[#allocation3] sm:$0xff] (!%p138_p3), %vm183_vm0, %v396_v5  ;;  %v190_v13 = vlaneseq (!%p138_p3) }
   0x8   : > { %186 = vst.msk [vmem:[#allocation4] sm:$0xff] (!%p138_p3), %vm183_vm0, %v396_v5 }
   0x9   : > { %v191_v14 = vand.u32 (!%p138_p3), 127, %v190_v13 }
   0xe   : > { %s471_s9 = smov (!%p164_p4, %s384_s9), 1  ;;  %v195_v6 = vld [vmem:[#allocation2] sm:$0xff]  ;;  %v210_v20 = vld [vmem:[#allocation3] sm:$0xff] }
   0xf   : > { %s326_s13 = sshll.u32 %s471_s9, 2  ;;  %s327_s17 = sshll.u32 %s471_s9, 3  ;;  %v217_v23 = vld [vmem:[#allocation4] sm:$0xff] }
  0x10   : > { %s170_s16 = scalar_lea.vmem %s463_s0, %s326_s13  ;;  %s174_s20 = scalar_lea.vmem %s464_s1, %s327_s17 }
  0x11   : > { %v187_v1 = vld [vmem:[%s170_s16] sm:$0xf]  ;;  %s178_s23 = scalar_lea.vmem %s465_s2, %s327_s17 }
  0x12   : > { %v188_v2 = vunpack.c.l.bf16 %v187_v1  ;;  %v194_v4 = vld [vmem:[%s174_s20] sm:$0xff] }
  0x13   : > { %220 = vperm.xlu1 %359, %v194_v4  }
  0x14   : > { %196 = vmax.xlane.f32.xlu0 %v188_v2 }
  0x92   : > { %v221_v15 = vpop.permute.xlu1 %220 }
  0x93   : > { %vm222_vm1 = vcmp.eq.s32.totalorder %v191_v14, %v221_v15 }
  0xa1   : > { %v197_v7 = vpop.xlane.xlu0 %196 }
  0xa2   : > { %v198_v8 = vmax.f32 %v195_v6, %v197_v7 }
  0xa4   : > { %v199_v9 = vsub.f32 %v195_v6, %v198_v8  ;;  %228 = vst.msk [vmem:[#allocation2] sm:$0xff] %vm183_vm0, %v198_v8  ;;  %204 = vperm.xlu0 %358, %v198_v8  }
  0xa6   : > { %v200_v18 = vmul.f32 1.442695, %v199_v9 }
 0x123   : > { %v205_v10 = vpop.permute.xlu0 %204 }
 0x124   : > { %v207_v11 = vsub.f32 %v188_v2, %v205_v10 }
 0x126   : > { %v208_v12 = vmul.f32 1.442695, %v207_v11 }
 0x128   : > { %360 = vpow2.f32 %v208_v12 }
 0x129   : > { %362 = vpow2.f32 %v200_v18 }
 0x132   : > { %v361_v16 = vpop.eup %360 }
 0x133   : > { %212 = vadd.xlane.f32.xlu1 %v361_v16  ;;  %v223_v17 = vsel %vm222_vm1, %v361_v16, 0.0  ;;  %v363_v19 = vpop.eup %362 }
 0x134   : > { %v211_v21 = vmul.f32 %v363_v19, %v210_v20  ;;  %v218_v25 = vmul.f32 %v363_v19, %v217_v23 }
 0x137   : > { %224 = vadd.xlane.f32.xlu1 %v223_v17 }
 0x1c0   : > { %v213_v22 = vpop.xlane.xlu1 %212 }
 0x1c1   : > { %v214_v24 = vadd.f32 %v213_v22, %v211_v21 }
 0x1c3   : > { %216 = vst.msk [vmem:[#allocation3] sm:$0xff] %vm183_vm0, %v214_v24 }
 0x1c4   : > { %v225_v26 = vpop.xlane.xlu1 %224 }
 0x1c5   : > { %v226_v27 = vadd.f32 %v225_v26, %v218_v25 }
 0x1c7   : > { %227 = vst.msk [vmem:[#allocation4] sm:$0xff] %vm183_vm0, %v226_v27 }
 0x1ca   : > { %v235_v28 = vld [vmem:[#allocation3] sm:$0xff] }
 0x1cb   : > { %364 = vlog2.f32 %v235_v28 }
 0x1ce   : > { %v232_v29 = vld [vmem:[#allocation4] sm:$0xff] }
 0x1cf   : > { %366 = vlog2.f32 %v232_v29 }
 0x1d5   : > { %v365_v30 = vpop.eup %364 }
 0x1d6   : > { %v237_v32 = vmul.f32 0.6931472, %v365_v30 }
 0x1d9   : > { %v367_v31 = vpop.eup %366 }
 0x1da   : > { %v234_v33 = vmul.f32 0.6931472, %v367_v31 }
 0x1dc   : > { %v238_v34 = vsub.f32 %v234_v33, %v237_v32 }
 0x1de   : > { %v239_v35 = vmul.f32 0.7, %v238_v34 }
 0x1e0   : > { %v240_v36 = vmul.f32 1.442695, %v239_v35 }
 0x1e2   : > { %368 = vpow2.f32 %v240_v36 }
 0x1ec   : > { %v369_v37 = vpop.eup %368 }
 0x1ed   : > { %v242_v38 = vsub.f32 1.0, %v369_v37 }
 0x1ef   : > { %v243_v39 = vmul.f32 1.4285715, %v242_v38 }
 0x1f1   : > { %244 = vst.msk [vmem:[%s178_s23] sm:$0xff] %vm183_vm0, %v243_v39 }
 0x1f2 PF: > { %s12_s11 = sadd.s32 1, %s392_s11   ;;  %s466_s9 = smov %s388_s10 }
 0x1f3   : > { %p9_p5 = scmp.ge.s32.totalorder %s12_s11, 4   ;;  %s467_s10 = smov %s469_s12 }
 0x1f5   :  { %11 = sbr.rel (!%p9_p5) target bundleno = 2 (0x2), region = 69 }

</bundles_post_ra>
